<compile_context>
chip_gen: v7x
topology: tpu7x:2x2x1
jax: 0.10.0
libtpu: 0.0.40
codegen_flags: <defaults>
</compile_context>

<pallas_src>
import jax
import jax.numpy as jnp
from jax import lax
from jax.experimental import pallas as pl
from jax.experimental.pallas import tpu as pltpu

_HIDDEN1 = 64
_HIDDEN2 = 32
_LANE = 128


def _round_up(n, m):
    return (n + m - 1) // m * m


def _mlp_kernel(x_ref, w1_ref, b1_ref, w2_ref, b2_ref, w3t_ref, b3t_ref, ot_ref):
    # x arrives in its original dtype (f32); cast to bf16 under the DMA.
    x = x_ref[...].astype(jnp.bfloat16)                                  # (tb, in_dim)
    # Layer 1: Linear(in_dim, 64 -> padded 128) + ReLU, f32 accumulate on MXU.
    h1 = jnp.dot(x, w1_ref[...], preferred_element_type=jnp.float32)
    h1 = jnp.maximum(h1 + b1_ref[...], 0.0).astype(jnp.bfloat16)         # (tb, 128)
    # Layer 2: Linear(64, 32 -> padded 128) + ReLU.
    h2 = jnp.dot(h1, w2_ref[...], preferred_element_type=jnp.float32)
    h2 = jnp.maximum(h2 + b2_ref[...], 0.0).astype(jnp.bfloat16)         # (tb, 128)
    # Layer 3, emitted transposed: (nc8, 128) . (tb, 128)^T -> (nc8, tb).
    # Lane (last) dim of the stored tile is the batch tile (multiple of 128)
    # instead of a 128-lane-padded class dim -> dense stores, ~16x fewer bytes.
    out_t = lax.dot_general(
        w3t_ref[...], h2,
        dimension_numbers=(((1,), (1,)), ((), ())),
        preferred_element_type=jnp.float32)
    ot_ref[...] = (out_t + b3t_ref[...]).astype(ot_ref.dtype)            # (nc8, tb)


def prepare_params(params):
    """One-time weight prep (call at init, not per forward): pad hidden dims to
    128 lanes, cast weights to bf16, pre-transpose the last layer so the kernel
    emits a (num_classes, batch) tile with a lane-dense store.  Zero padding of
    rows/cols/biases keeps the math exact through ReLU."""
    w1, b1 = params["w1"], params["b1"]
    w2, b2 = params["w2"], params["b2"]
    w3, b3 = params["w3"], params["b3"]
    in_dim = w1.shape[0]
    num_classes = w3.shape[1]
    nc8 = _round_up(num_classes, 8)

    def pad2(a, rows, cols):
        return jnp.pad(a, ((0, rows - a.shape[0]), (0, cols - a.shape[1])))

    return dict(
        in_dim=in_dim,
        num_classes=num_classes,
        w1=pad2(w1, in_dim, _LANE).astype(jnp.bfloat16),
        b1=pad2(b1, 1, _LANE).astype(jnp.float32),
        w2=pad2(w2, _LANE, _LANE).astype(jnp.bfloat16),
        b2=pad2(b2, 1, _LANE).astype(jnp.float32),
        w3t=pad2(w3.T, nc8, _LANE).astype(jnp.bfloat16),     # (nc8, 128)
        b3t=pad2(b3.T, nc8, 1).astype(jnp.float32),          # (nc8, 1)
    )


def cyber_threat_nn_forward(x, prepared, *, batch_tile=None):
    """3-layer MLP forward as one Pallas kernel.  x: (B, input_size) float32."""
    in_dim = prepared["in_dim"]
    num_classes = prepared["num_classes"]
    w1, b1 = prepared["w1"], prepared["b1"]
    w2, b2 = prepared["w2"], prepared["b2"]
    w3t, b3t = prepared["w3t"], prepared["b3t"]
    nc8 = w3t.shape[0]

    B = x.shape[0]
    assert x.shape[1] == in_dim

    # Batch tile: multiple of 128 (lane-dense transposed output), >=2 grid
    # steps once B >= 256 (v7x megacore), capped at 4096 rows and by a per-
    # buffer VMEM budget for large in_dim.
    if batch_tile is None:
        target = -(-B // 2) if B >= 2 * _LANE else B
        tb = _round_up(max(target, 1), _LANE)
        vmem_row_cap = max(_LANE,
                           (8 * 1024 * 1024) // max(in_dim * 4, 1) // _LANE * _LANE)
        tb = min(tb, 4096, vmem_row_cap)
    else:
        tb = _round_up(batch_tile, _LANE)

    # Pad the batch only when the tile does not divide it.
    if B % tb == 0:
        x_in, B_pad = x, B
    else:
        B_pad = _round_up(B, tb)
        x_in = jnp.pad(x, ((0, B_pad - B), (0, 0)))
    grid = (B_pad // tb,)

    # VMEM limit from the true footprint (double-buffered x / out tiles,
    # pipeline-buffered weights, live activations) with 2x headroom.
    itemsize = jnp.dtype(x.dtype).itemsize
    bytes_x = 2 * tb * in_dim * itemsize
    bytes_out = 2 * nc8 * tb * 4
    bytes_w = 2 * 2 * (in_dim * _LANE + _LANE * _LANE + nc8 * _LANE)
    bytes_b = 2 * 4 * (2 * _LANE + nc8)
    bytes_act = 3 * tb * _LANE * 4
    footprint = bytes_x + bytes_out + bytes_w + bytes_b + bytes_act
    vmem_limit = int(min(max(2 * footprint, 16 * 1024 * 1024), 56 * 1024 * 1024))

    rep = lambda shape: pl.BlockSpec(shape, lambda i: (0, 0))

    out_t = pl.pallas_call(
        _mlp_kernel,
        out_shape=jax.ShapeDtypeStruct((nc8, B_pad), jnp.float32),
        grid_spec=pltpu.PrefetchScalarGridSpec(
            num_scalar_prefetch=0,
            grid=grid,
            in_specs=[
                pl.BlockSpec((tb, in_dim), lambda i: (i, 0)),
                rep(w1.shape), rep(b1.shape),
                rep(w2.shape), rep(b2.shape),
                rep(w3t.shape), rep(b3t.shape),
            ],
            out_specs=pl.BlockSpec((nc8, tb), lambda i: (0, i)),
        ),
        compiler_params=pltpu.CompilerParams(
            dimension_semantics=("parallel",),
            vmem_limit_bytes=vmem_limit),
    )(x_in, w1, b1, w2, b2, w3t, b3t)

    # Tiny (nc, B) -> (B, nc) untranspose in the wrapper.
    return out_t[:num_classes, :B].T


def init_params(key, input_size, num_classes):
    """Deterministic synthetic parameters (PyTorch-like uniform init)."""
    def linear(k, fan_in, fan_out):
        kw, kb = jax.random.split(k)
        bound = 1.0 / jnp.sqrt(fan_in)
        w = jax.random.uniform(kw, (fan_in, fan_out), jnp.float32, -bound, bound)
        b = jax.random.uniform(kb, (1, fan_out), jnp.float32, -bound, bound)
        return w, b

    k1, k2, k3 = jax.random.split(key, 3)
    w1, b1 = linear(k1, input_size, _HIDDEN1)
    w2, b2 = linear(k2, _HIDDEN1, _HIDDEN2)
    w3, b3 = linear(k3, _HIDDEN2, num_classes)
    return dict(w1=w1, b1=b1, w2=w2, b2=b2, w3=w3, b3=b3)


def _reference_forward(x, p):
    h1 = jnp.maximum(x @ p["w1"] + p["b1"], 0.0)
    h2 = jnp.maximum(h1 @ p["w2"] + p["b2"], 0.0)
    return h2 @ p["w3"] + p["b3"]


if __name__ == "__main__":
    key = jax.random.PRNGKey(0)
    k_x, k_p = jax.random.split(key)

    batch = 8
    input_size = 32
    num_classes = 8

    x = jax.random.normal(k_x, (batch, input_size), dtype=jnp.float32)
    params = init_params(k_p, input_size, num_classes)
    prepared = prepare_params(params)   # one-time pad / cast / transpose

    out = cyber_threat_nn_forward(x, prepared)
    out = jax.block_until_ready(out)

    ref = _reference_forward(x, params)
    assert out.shape == (batch, num_classes)
    # bf16 activations/weights with f32 accumulation -> loose-ish tolerance.
    assert jnp.allclose(out, ref, atol=3e-2, rtol=3e-2), (
        float(jnp.max(jnp.abs(out - ref))))

    print("KERNEL_OK")
</pallas_src>

<mosaic_0001>
module attributes {stable_mosaic.version = 11 : i64} {
  func.func @_mlp_kernel(%arg0: i32, %arg1: memref<128x32xf32, #tpu.memory_space<vmem>>, %arg2: memref<32x128xbf16, #tpu.memory_space<vmem>>, %arg3: memref<1x128xf32, #tpu.memory_space<vmem>>, %arg4: memref<128x128xbf16, #tpu.memory_space<vmem>>, %arg5: memref<1x128xf32, #tpu.memory_space<vmem>>, %arg6: memref<8x128xbf16, #tpu.memory_space<vmem>>, %arg7: memref<8x1xf32, #tpu.memory_space<vmem>>, %arg8: memref<8x128xf32, #tpu.memory_space<vmem>>) attributes {dimension_semantics = [#tpu.dimension_semantics<parallel>], iteration_bounds = array<i64: 1>, scalar_prefetch = 0 : i64, scratch_operands = 0 : i64, tpu.core_type = #tpu.core_type<tc>, window_params = [{transform_indices = @transform_0, window_bounds = array<i64: 128, 32>}, {pipeline_mode = #tpu.pipeline_mode<synchronous>, transform_indices = @transform_1, window_bounds = array<i64: 32, 128>}, {pipeline_mode = #tpu.pipeline_mode<synchronous>, transform_indices = @transform_2, window_bounds = array<i64: 1, 128>}, {pipeline_mode = #tpu.pipeline_mode<synchronous>, transform_indices = @transform_3, window_bounds = array<i64: 128, 128>}, {pipeline_mode = #tpu.pipeline_mode<synchronous>, transform_indices = @transform_4, window_bounds = array<i64: 1, 128>}, {pipeline_mode = #tpu.pipeline_mode<synchronous>, transform_indices = @transform_5, window_bounds = array<i64: 8, 128>}, {pipeline_mode = #tpu.pipeline_mode<synchronous>, transform_indices = @transform_6, window_bounds = array<i64: 8, 1>}, {transform_indices = @transform_7, window_bounds = array<i64: 8, 128>}]} {
    %c0 = arith.constant 0 : index
    %c0_0 = arith.constant 0 : index
    %0 = vector.load %arg1[%c0, %c0_0] : memref<128x32xf32, #tpu.memory_space<vmem>>, vector<128x32xf32>
    %1 = arith.truncf %0 : vector<128x32xf32> to vector<128x32xbf16>
    %c0_1 = arith.constant 0 : index
    %c0_2 = arith.constant 0 : index
    %2 = vector.load %arg2[%c0_1, %c0_2] : memref<32x128xbf16, #tpu.memory_space<vmem>>, vector<32x128xbf16>
    %cst = arith.constant dense<0.000000e+00> : vector<128x128xf32>
    %3 = tpu.matmul %1, %2, %cst {dimension_numbers = #tpu.dot_dimension_numbers<[1], [0], [0], [1], [0, 0, 1, 1], [], []>} : vector<128x32xbf16>, vector<32x128xbf16>, vector<128x128xf32> -> vector<128x128xf32>
    %c0_3 = arith.constant 0 : index
    %c0_4 = arith.constant 0 : index
    %4 = vector.load %arg3[%c0_3, %c0_4] : memref<1x128xf32, #tpu.memory_space<vmem>>, vector<1x128xf32>
    %5 = vector.broadcast %4 : vector<1x128xf32> to vector<128x128xf32>
    %6 = arith.addf %3, %5 : vector<128x128xf32>
    %cst_5 = arith.constant 0.000000e+00 : f32
    %7 = vector.broadcast %cst_5 : f32 to vector<128x128xf32>
    %8 = arith.maximumf %6, %7 : vector<128x128xf32>
    %9 = arith.truncf %8 : vector<128x128xf32> to vector<128x128xbf16>
    %c0_6 = arith.constant 0 : index
    %c0_7 = arith.constant 0 : index
    %10 = vector.load %arg4[%c0_6, %c0_7] : memref<128x128xbf16, #tpu.memory_space<vmem>>, vector<128x128xbf16>
    %cst_8 = arith.constant dense<0.000000e+00> : vector<128x128xf32>
    %11 = tpu.matmul %9, %10, %cst_8 {dimension_numbers = #tpu.dot_dimension_numbers<[1], [0], [0], [1], [0, 0, 1, 1], [], []>} : vector<128x128xbf16>, vector<128x128xbf16>, vector<128x128xf32> -> vector<128x128xf32>
    %c0_9 = arith.constant 0 : index
    %c0_10 = arith.constant 0 : index
    %12 = vector.load %arg5[%c0_9, %c0_10] : memref<1x128xf32, #tpu.memory_space<vmem>>, vector<1x128xf32>
    %13 = vector.broadcast %12 : vector<1x128xf32> to vector<128x128xf32>
    %14 = arith.addf %11, %13 : vector<128x128xf32>
    %cst_11 = arith.constant 0.000000e+00 : f32
    %15 = vector.broadcast %cst_11 : f32 to vector<128x128xf32>
    %16 = arith.maximumf %14, %15 : vector<128x128xf32>
    %17 = arith.truncf %16 : vector<128x128xf32> to vector<128x128xbf16>
    %c0_12 = arith.constant 0 : index
    %c0_13 = arith.constant 0 : index
    %18 = vector.load %arg6[%c0_12, %c0_13] : memref<8x128xbf16, #tpu.memory_space<vmem>>, vector<8x128xbf16>
    %cst_14 = arith.constant dense<0.000000e+00> : vector<8x128xf32>
    %19 = tpu.matmul %18, %17, %cst_14 {dimension_numbers = #tpu.dot_dimension_numbers<[1], [1], [0], [0], [0, 0, 1, 0], [], []>} : vector<8x128xbf16>, vector<128x128xbf16>, vector<8x128xf32> -> vector<8x128xf32>
    %c0_15 = arith.constant 0 : index
    %c0_16 = arith.constant 0 : index
    %20 = vector.load %arg7[%c0_15, %c0_16] : memref<8x1xf32, #tpu.memory_space<vmem>>, vector<8x1xf32>
    %21 = vector.broadcast %20 : vector<8x1xf32> to vector<8x128xf32>
    %22 = arith.addf %19, %21 : vector<8x128xf32>
    %c0_17 = arith.constant 0 : index
    %c0_18 = arith.constant 0 : index
    %23 = vector.load %arg8[%c0_17, %c0_18] : memref<8x128xf32, #tpu.memory_space<vmem>>, vector<8x128xf32>
    tpu.vector_store %arg8[%c0_17, %c0_18], %22 {strides = array<i32>} : memref<8x128xf32, #tpu.memory_space<vmem>>, vector<8x128xf32>,
    return
  }
  func.func @transform_0(%arg0: i32) -> (i32, i32) {
    %c0_i32 = arith.constant 0 : i32
    %c0_i32_0 = arith.constant 0 : i32
    return %arg0, %c0_i32 : i32, i32
  }
  func.func @transform_1(%arg0: i32) -> (i32, i32) {
    %c0_i32 = arith.constant 0 : i32
    %c0_i32_0 = arith.constant 0 : i32
    %c0_i32_1 = arith.constant 0 : i32
    return %c0_i32, %c0_i32_0 : i32, i32
  }
  func.func @transform_2(%arg0: i32) -> (i32, i32) {
    %c0_i32 = arith.constant 0 : i32
    %c0_i32_0 = arith.constant 0 : i32
    %c0_i32_1 = arith.constant 0 : i32
    return %c0_i32, %c0_i32_0 : i32, i32
  }
  func.func @transform_3(%arg0: i32) -> (i32, i32) {
    %c0_i32 = arith.constant 0 : i32
    %c0_i32_0 = arith.constant 0 : i32
    %c0_i32_1 = arith.constant 0 : i32
    return %c0_i32, %c0_i32_0 : i32, i32
  }
  func.func @transform_4(%arg0: i32) -> (i32, i32) {
    %c0_i32 = arith.constant 0 : i32
    %c0_i32_0 = arith.constant 0 : i32
    %c0_i32_1 = arith.constant 0 : i32
    return %c0_i32, %c0_i32_0 : i32, i32
  }
  func.func @transform_5(%arg0: i32) -> (i32, i32) {
    %c0_i32 = arith.constant 0 : i32
    %c0_i32_0 = arith.constant 0 : i32
    %c0_i32_1 = arith.constant 0 : i32
    return %c0_i32, %c0_i32_0 : i32, i32
  }
  func.func @transform_6(%arg0: i32) -> (i32, i32) {
    %c0_i32 = arith.constant 0 : i32
    %c0_i32_0 = arith.constant 0 : i32
    %c0_i32_1 = arith.constant 0 : i32
    return %c0_i32, %c0_i32_0 : i32, i32
  }
  func.func @transform_7(%arg0: i32) -> (i32, i32) {
    %c0_i32 = arith.constant 0 : i32
    %c0_i32_0 = arith.constant 0 : i32
    return %c0_i32, %arg0 : i32, i32
  }
}

</mosaic_0001>

<bundles_post_ra>
// kernel: tpu_custom_call.1
= control target key start
LH: loop header
LB: loop body
LE: loop exit
PB: predicated region body
PF: predicated region fallthrough
CT: control target
= control target key end

     0   :  { %vm75_vm0 = vcmask 261120   ;;  %s804_s0 = inlined_call_operand.vmem [shape: f32[128,32], index: 0, kind: input, shape index: {}]   ;;  %s805_s1 = inlined_call_operand.vmem [shape: bf16[32,128], index: 1, kind: input, shape index: {}]   ;;  %s806_s2 = inlined_call_operand.vmem [shape: f32[1,128], index: 2, kind: input, shape index: {}]   ;;  %s807_s3 = inlined_call_operand.vmem [shape: bf16[128,128], index: 3, kind: input, shape index: {}]   ;;  %s808_s4 = inlined_call_operand.vmem [shape: f32[1,128], index: 4, kind: input, shape index: {}]   ;;  %s809_s5 = inlined_call_operand.vmem [shape: bf16[8,128], index: 5, kind: input, shape index: {}]   ;;  %s810_s6 = inlined_call_operand.vmem [shape: f32[8,1], index: 6, kind: input, shape index: {}]   ;;  %s811_s7 = inlined_call_operand.hbm [shape: f32[8,128], index: 7, kind: output, shape index: {}]  }
   0x1   :  { %v607_v0 = vld [vmem:[%s805_s1] sm:$0xff]   ;;  %v608_v1 = vld [vmem:[%s805_s1 + $0x8] sm:$0xff]   ;;  %v30_v5 = vld [vmem:[%s804_s0 + $0x10] sm:$0xff] }
   0x2   :  { %530 = vmatprep.subr.bf16.mxu1 %v607_v0  ;;  %v28_v2 = vld [vmem:[%s804_s0] sm:$0xff]  ;;  %v29_v3 = vld [vmem:[%s804_s0 + $0x8] sm:$0xff]  ;;  %v31_v6 = vld [vmem:[%s804_s0 + $0x18] sm:$0xff] }
   0x3   :  { %531 = vmatpush3.bf16.msra.mxu1 %v607_v0  ;;  %v44_v4 = vpack.c.bf16 %v29_v3, %v28_v2  ;;  %v32_v7 = vld [vmem:[%s804_s0 + $0x20] sm:$0xff]  ;;  %v33_v8 = vld [vmem:[%s804_s0 + $0x28] sm:$0xff]  ;;  %v45_v9 = vpack.c.bf16 %v31_v6, %v30_v5  ;;  %v34_v12 = vld [vmem:[%s804_s0 + $0x30] sm:$0xff] }
   0x4   :  { %532 = vmatprep.subr.bf16.mxu1 %v608_v1  ;;  %v46_v10 = vpack.c.bf16 %v33_v8, %v32_v7  ;;  %v609_v11 = vld [vmem:[%s807_s3] sm:$0xff]   ;;  %v35_v13 = vld [vmem:[%s804_s0 + $0x38] sm:$0xff]  ;;  %v610_v14 = vld [vmem:[%s807_s3 + $0x8] sm:$0xff]  }
   0x5   :  { %534 = vmatprep.mubr.msk.bf16.mxu1 %vm75_vm0, %v44_v4  ;;  %v36_v15 = vld [vmem:[%s804_s0 + $0x40] sm:$0xff]  ;;  %v37_v16 = vld [vmem:[%s804_s0 + $0x48] sm:$0xff]  ;;  %v611_v17 = vld [vmem:[%s807_s3 + $0x10] sm:$0xff]   ;;  %v47_v18 = vpack.c.bf16 %v35_v13, %v34_v12 }
   0x7   :  { %533 = vmatpush3.bf16.msra.mxu1 %v608_v1 }
   0x8   :  { %550 = vmatprep.subr.bf16.mxu1 %v609_v11 }
   0xa   :  { %535 = vmatmul.mubr.msk.bf16.vlgmr.msra.gmra.mrb[0].mxu1 %vm75_vm0, %v45_v9 }
   0xb   :  { %538 = vmatprep.mubr.msk.bf16.mxu1 %vm75_vm0, %v46_v10  ;;  %551 = vmatpush3.bf16.msra.mxu1 %v609_v11 }
   0xc   :  { %552 = vmatprep.subr.bf16.mxu1 %v610_v14 }
   0xd   :  { %12 = vsyncpa [#allocation3], 0  ;;  %v48_v19 = vpack.c.bf16 %v37_v16, %v36_v15  ;;  %v612_v20 = vld [vmem:[%s807_s3 + $0x18] sm:$0xff]   ;;  %v38_v21 = vld [vmem:[%s804_s0 + $0x50] sm:$0xff]  ;;  %vm642_vm1 = vmmov 0   ;;  %s644_s8 = smov [#allocation2]  }
   0xe   :  { %v39_v22 = vld [vmem:[%s804_s0 + $0x58] sm:$0xff]  ;;  %v40_v23 = vld [vmem:[%s804_s0 + $0x60] sm:$0xff]  ;;  %v41_v24 = vld [vmem:[%s804_s0 + $0x68] sm:$0xff]  ;;  %s467_s9 = sshll.u32 %s644_s8, 4  ;;  %s468_s9 = int_to_ptr.vmem [resolvable:$true] %s467_s9 }
   0xf   :  { %553 = vmatpush3.bf16.msra.mxu1 %v610_v14  ;;  %v613_v25 = vld [vmem:[%s807_s3 + $0x20] sm:$0xff]   ;;  %v49_v26 = vpack.c.bf16 %v39_v22, %v38_v21  ;;  %v50_v27 = vpack.c.bf16 %v41_v24, %v40_v23  ;;  %v614_v28 = vld [vmem:[%s807_s3 + $0x28] sm:$0xff]   ;;  %v42_v29 = vld [vmem:[%s804_s0 + $0x70] sm:$0xff]  ;;  %s617_s10 = scalar_lea.vmem %s468_s9, 128  ;;  %p622_p1 = scmp.lt.s32.totalorder %s468_s9, %s468_s9 }
  0x10   :  { %554 = vmatprep.subr.bf16.mxu1 %v611_v17  ;;  %v43_v30 = vld [vmem:[%s804_s0 + $0x78] sm:$0xff]  ;;  %v615_v32 = vld [vmem:[%s807_s3 + $0x30] sm:$0xff]   ;;  %v475_v34 = vld [vmem:[%s806_s2] ss:$0 sm:$0xff]  ;;  %p618_p0 = scmp.ne.s32.totalorder %s468_s9, %s617_s10  ;;  %p623_p2 = scmp.lt.s32.totalorder %s617_s10, %s617_s10 }
  0x11   :  { %v51_v31 = vpack.c.bf16 %v43_v30, %v42_v29  ;;  %v616_v33 = vld [vmem:[%s807_s3 + $0x38] sm:$0xff]   ;;  %v643_v29 = vmov 0   ;;  %v486_v30 = vld [vmem:[%s808_s4] ss:$0 sm:$0xff] }
  0x12   :  { %539 = vmatmul.mubr.msk.bf16.gmra.mrb[4].mxu1 %vm75_vm0, %v47_v18  ;;  %606 = vset.pattern.permute.xlu0 %v643_v29  ;;  %p624_p3 = por %p623_p2, %p622_p1 }
  0x13   :  { %542 = vmatprep.mubr.msk.bf16.mxu1 %vm75_vm0, %v48_v19  ;;  %555 = vmatpush3.bf16.msra.mxu1 %v611_v17 }
  0x14   :  { %556 = vmatprep.subr.bf16.mxu1 %v612_v20  ;;  %p625_p4 = pnand %p624_p3, %p618_p0 }
  0x17   :  { %557 = vmatpush3.bf16.msra.mxu1 %v612_v20 }
  0x18   :  { %558 = vmatprep.subr.bf16.mxu1 %v613_v25 }
  0x1a   :  { %543 = vmatmul.mubr.msk.bf16.gmra.mrb[8].mxu1 %vm75_vm0, %v49_v26 }
  0x1b   :  { %546 = vmatprep.mubr.msk.bf16.mxu1 %vm75_vm0, %v50_v27  ;;  %559 = vmatpush3.bf16.msra.mxu1 %v613_v25  ;;  %v641_v27 = vmov 0.0  }
  0x1c   :  { %560 = vmatprep.subr.bf16.mxu1 %v614_v28  ;;  %582 = vmatprep.subr.bf16.mxu0 %v641_v27 }
  0x1d   :  { %598 = vmatprep.mubr.msk.bf16.mxu0 %vm642_vm1, %v641_v27 }
  0x1f   :  { %561 = vmatpush3.bf16.msra.mxu1 %v614_v28  ;;  %v414_v28 = vld [vmem:[%s810_s6] sm:$0xff] }
  0x20   :  { %562 = vmatprep.subr.bf16.mxu1 %v615_v32  ;;  %417 = vperm.xlu0 %606, %v414_v28  }
  0x22   :  { %547 = vmatmul.mubr.msk.bf16.gmra.mrb[12].mxu1 %vm75_vm0, %v51_v31 }
  0x23   :  { %563 = vmatpush3.bf16.msra.mxu1 %v615_v32 }
  0x24   :  { %564 = vmatprep.subr.bf16.mxu1 %v616_v33 }
  0x27   :  { %565 = vmatpush3.bf16.msra.mxu1 %v616_v33 }
  0xdd   :  { %v536_v35 = vpop.f32.mrb[0].mxu1 }
  0xde   :  { %v143_v36 = vadd.f32 %v536_v35, %v475_v34  ;;  %v134_v37 = vpop.f32.mrb[1].mxu1 }
  0xdf   :  { %v135_v38 = vadd.f32 %v475_v34, %v134_v37  ;;  %v537_v39 = vpop.f32.mrb[2].mxu1 }
  0xe0   :  { %v146_v40 = vadd.f32 %v537_v39, %v475_v34  ;;  %v137_v41 = vpop.f32.mrb[3].mxu1  ;;  %v199_v43 = vmax.f32 %v143_v36, 0.0 }
  0xe1   :  { %v138_v42 = vadd.f32 %v475_v34, %v137_v41  ;;  %v197_v45 = vmax.f32 %v135_v38, 0.0 }
  0xe2   :  { %v200_v44 = vmax.f32 %v146_v40, 0.0 }
  0xe3   :  { %v198_v46 = vmax.f32 %v138_v42, 0.0 }
  0xe4   :  { %v214_v47 = vpack.c.bf16 %v200_v44, %v199_v43 }
  0xe5   :  { %v213_v48 = vpack.c.bf16 %v198_v46, %v197_v45  ;;  %v540_v49 = vpop.f32.mrb[4].mxu1 }
  0xe6   :  { %v159_v50 = vadd.f32 %v540_v49, %v475_v34  ;;  %v150_v51 = vpop.f32.mrb[5].mxu1 }
  0xe7   :  { %v151_v52 = vadd.f32 %v475_v34, %v150_v51  ;;  %566 = vmatprep.mubr.bf16.mxu1 %v213_v48  ;;  %v541_v53 = vpop.f32.mrb[6].mxu1 }
  0xe8   :  { %v203_v54 = vmax.f32 %v159_v50, 0.0  ;;  %v162_v55 = vadd.f32 %v541_v53, %v475_v34  ;;  %567 = vmatmul.mubr.bf16.vlgmr.msra.gmra.mrb[16].mxu1 %v214_v47  ;;  %v153_v56 = vpop.f32.mrb[7].mxu1 }
  0xe9   :  { %v201_v57 = vmax.f32 %v151_v52, 0.0  ;;  %v154_v58 = vadd.f32 %v475_v34, %v153_v56 }
  0xea   :  { %v204_v59 = vmax.f32 %v162_v55, 0.0 }
  0xeb   :  { %v202_v60 = vmax.f32 %v154_v58, 0.0 }
  0xec   :  { %v216_v61 = vpack.c.bf16 %v204_v59, %v203_v54 }
  0xed   :  { %v215_v62 = vpack.c.bf16 %v202_v60, %v201_v57  ;;  %v544_v63 = vpop.f32.mrb[8].mxu1 }
  0xee   :  { %v175_v0 = vadd.f32 %v544_v63, %v475_v34  ;;  %v166_v1 = vpop.f32.mrb[9].mxu1 }
  0xef   :  { %570 = vmatprep.mubr.bf16.mxu1 %v215_v62  ;;  %v167_v2 = vadd.f32 %v475_v34, %v166_v1  ;;  %v545_v3 = vpop.f32.mrb[10].mxu1 }
  0xf0   :  { %571 = vmatmul.mubr.bf16.gmra.mrb[20].mxu1 %v216_v61  ;;  %v207_v4 = vmax.f32 %v175_v0, 0.0  ;;  %v178_v5 = vadd.f32 %v545_v3, %v475_v34  ;;  %v169_v6 = vpop.f32.mrb[11].mxu1 }
  0xf1   :  { %v205_v7 = vmax.f32 %v167_v2, 0.0  ;;  %v170_v8 = vadd.f32 %v475_v34, %v169_v6 }
  0xf2   :  { %v208_v9 = vmax.f32 %v178_v5, 0.0 }
  0xf3   :  { %v206_v10 = vmax.f32 %v170_v8, 0.0 }
  0xf4   :  { %v218_v11 = vpack.c.bf16 %v208_v9, %v207_v4 }
  0xf5   :  { %v217_v12 = vpack.c.bf16 %v206_v10, %v205_v7  ;;  %v548_v13 = vpop.f32.mrb[12].mxu1 }
  0xf6   :  { %v191_v14 = vadd.f32 %v548_v13, %v475_v34  ;;  %v182_v15 = vpop.f32.mrb[13].mxu1 }
  0xf7   :  { %574 = vmatprep.mubr.bf16.mxu1 %v217_v12  ;;  %v183_v16 = vadd.f32 %v475_v34, %v182_v15  ;;  %v549_v17 = vpop.f32.mrb[14].mxu1 }
  0xf8   :  { %575 = vmatmul.mubr.bf16.gmra.mrb[24].mxu1 %v218_v11  ;;  %v211_v18 = vmax.f32 %v191_v14, 0.0  ;;  %v194_v19 = vadd.f32 %v549_v17, %v475_v34  ;;  %v185_v20 = vpop.f32.mrb[15].mxu1 }
  0xf9   :  { %v209_v21 = vmax.f32 %v183_v16, 0.0  ;;  %v186_v22 = vadd.f32 %v475_v34, %v185_v20 }
  0xfa   :  { %v212_v23 = vmax.f32 %v194_v19, 0.0 }
  0xfb   :  { %v210_v24 = vmax.f32 %v186_v22, 0.0 }
  0xfc   :  { %v220_v25 = vpack.c.bf16 %v212_v23, %v211_v18  ;;  %v413_v23 = vld [vmem:[%s809_s5] sm:$0xf] }
  0xfd   :  { %v219_v26 = vpack.c.bf16 %v210_v24, %v209_v21  ;;  %v418_v24 = vpop.permute.xlu0 %417 }
  0xff   :  { %578 = vmatprep.mubr.bf16.mxu1 %v219_v26 }
 0x100   :  { %579 = vmatmul.mubr.bf16.gmra.mrb[28].mxu1 %v220_v25 }
 0x1bb   :  { %v568_v31 = vpop.f32.mrb[16].mxu1 }
 0x1bc   :  { %v335_v32 = vadd.f32 %v568_v31, %v486_v30  ;;  %v326_v33 = vpop.f32.mrb[17].mxu1 }
 0x1bd   :  { %v327_v34 = vadd.f32 %v486_v30, %v326_v33  ;;  %v569_v35 = vpop.f32.mrb[18].mxu1 }
 0x1be   :  { %v338_v36 = vadd.f32 %v569_v35, %v486_v30  ;;  %v329_v37 = vpop.f32.mrb[19].mxu1  ;;  %v391_v39 = vmax.f32 %v335_v32, 0.0 }
 0x1bf   :  { %v330_v38 = vadd.f32 %v486_v30, %v329_v37  ;;  %v389_v41 = vmax.f32 %v327_v34, 0.0 }
 0x1c0   :  { %v392_v40 = vmax.f32 %v338_v36, 0.0 }
 0x1c1   :  { %v390_v42 = vmax.f32 %v330_v38, 0.0 }
 0x1c2   :  { %v406_v43 = vpack.c.bf16 %v392_v40, %v391_v39 }
 0x1c3   :  { %v572_v44 = vpop.f32.mrb[20].mxu1  ;;  %v405_v45 = vpack.c.bf16 %v390_v42, %v389_v41 }
 0x1c4   :  { %v351_v46 = vadd.f32 %v572_v44, %v486_v30  ;;  %v342_v47 = vpop.f32.mrb[21].mxu1 }
 0x1c5   :  { %v343_v48 = vadd.f32 %v486_v30, %v342_v47  ;;  %583 = vmatpush3.bf16.xpose.msra.mxu0 %v405_v45  ;;  %v573_v49 = vpop.f32.mrb[22].mxu1 }
 0x1c6   :  { %v395_v50 = vmax.f32 %v351_v46, 0.0  ;;  %v354_v51 = vadd.f32 %v573_v49, %v486_v30  ;;  %v345_v52 = vpop.f32.mrb[23].mxu1  ;;  %584 = vmatprep.subr.bf16.mxu0 %v641_v27 }
 0x1c7   :  { %v393_v53 = vmax.f32 %v343_v48, 0.0  ;;  %v346_v54 = vadd.f32 %v486_v30, %v345_v52 }
 0x1c8   :  { %v396_v55 = vmax.f32 %v354_v51, 0.0 }
 0x1c9   :  { %v394_v56 = vmax.f32 %v346_v54, 0.0 }
 0x1ca   :  { %v408_v57 = vpack.c.bf16 %v396_v55, %v395_v50 }
 0x1cb   :  { %v407_v58 = vpack.c.bf16 %v394_v56, %v393_v53  ;;  %v576_v59 = vpop.f32.mrb[24].mxu1 }
 0x1cc   :  { %v367_v60 = vadd.f32 %v576_v59, %v486_v30  ;;  %v358_v61 = vpop.f32.mrb[25].mxu1 }
 0x1cd   :  { %585 = vmatpush3.bf16.xpose.msra.mxu0 %v406_v43  ;;  %v359_v62 = vadd.f32 %v486_v30, %v358_v61  ;;  %v577_v63 = vpop.f32.mrb[26].mxu1 }
 0x1ce   :  { %v399_v0 = vmax.f32 %v367_v60, 0.0  ;;  %586 = vmatprep.subr.bf16.mxu0 %v641_v27  ;;  %v370_v1 = vadd.f32 %v577_v63, %v486_v30  ;;  %v361_v2 = vpop.f32.mrb[27].mxu1 }
 0x1cf   :  { %v397_v3 = vmax.f32 %v359_v62, 0.0  ;;  %v362_v4 = vadd.f32 %v486_v30, %v361_v2 }
 0x1d0   :  { %v400_v5 = vmax.f32 %v370_v1, 0.0 }
 0x1d1   :  { %v398_v6 = vmax.f32 %v362_v4, 0.0 }
 0x1d2   :  { %v410_v7 = vpack.c.bf16 %v400_v5, %v399_v0 }
 0x1d3   :  { %v409_v8 = vpack.c.bf16 %v398_v6, %v397_v3  ;;  %v580_v9 = vpop.f32.mrb[28].mxu1 }
 0x1d4   :  { %v383_v10 = vadd.f32 %v580_v9, %v486_v30  ;;  %v374_v11 = vpop.f32.mrb[29].mxu1 }
 0x1d5   :  { %587 = vmatpush3.bf16.xpose.msra.mxu0 %v407_v58  ;;  %v375_v12 = vadd.f32 %v486_v30, %v374_v11  ;;  %v581_v13 = vpop.f32.mrb[30].mxu1 }
 0x1d6   :  { %588 = vmatprep.subr.bf16.mxu0 %v641_v27  ;;  %v403_v14 = vmax.f32 %v383_v10, 0.0  ;;  %v386_v15 = vadd.f32 %v581_v13, %v486_v30  ;;  %v377_v16 = vpop.f32.mrb[31].mxu1 }
 0x1d7   :  { %v401_v17 = vmax.f32 %v375_v12, 0.0  ;;  %v378_v18 = vadd.f32 %v486_v30, %v377_v16 }
 0x1d8   :  { %v404_v19 = vmax.f32 %v386_v15, 0.0 }
 0x1d9   :  { %v402_v20 = vmax.f32 %v378_v18, 0.0 }
 0x1da   :  { %v412_v21 = vpack.c.bf16 %v404_v19, %v403_v14 }
 0x1db   :  { %v411_v22 = vpack.c.bf16 %v402_v20, %v401_v17 }
 0x1dd   :  { %589 = vmatpush3.bf16.xpose.msra.mxu0 %v408_v57 }
 0x1de   :  { %590 = vmatprep.subr.bf16.mxu0 %v641_v27 }
 0x1e5   :  { %591 = vmatpush3.bf16.xpose.msra.mxu0 %v409_v8 }
 0x1e6   :  { %592 = vmatprep.subr.bf16.mxu0 %v641_v27 }
 0x1ed   :  { %593 = vmatpush3.bf16.xpose.msra.mxu0 %v410_v7 }
 0x1ee   :  { %594 = vmatprep.subr.bf16.mxu0 %v641_v27 }
 0x1f5   :  { %595 = vmatpush3.bf16.xpose.msra.mxu0 %v411_v22 }
 0x1f6   :  { %596 = vmatprep.subr.bf16.mxu0 %v641_v27 }
 0x1fd   :  { %597 = vmatpush3.bf16.xpose.msra.mxu0 %v412_v21 }
 0x204   :  { %599 = vmatmul.mubr.bf16.vlgmr.msra.gmra.mrb[0].mxu0 %v413_v23 }
 0x2d7   :  { %v454_v25 = vpop.f32.mrb[0].mxu0 }
 0x2d8   :  { %v455_v26 = vadd.f32 %v454_v25, %v418_v24  ;;  %v600_v28 = vpop.f32.mrb[1].mxu0 }
 0x2d9   :  { %v457_v29 = vpop.f32.mrb[2].mxu0 }
 0x2da   :  { %460 = vst [vmem:[#allocation2] sm:$0xff] %v455_v26  ;;  %v601_v30 = vpop.f32.mrb[3].mxu0 }
 0x2db   :  { %628 = shalt.err (!%p625_p4)
}
 0x2dc   :  { %s629_s12 = scalar_lea.hbm %s811_s7, 128 }
 0x2dd   :  { %p630_p5 = scmp.ne.s32.totalorder %s811_s7, %s629_s12  ;;  %p633_p6 = scmp.lt.u32.totalorder %s629_s12, %s811_s7 }
 0x2df   :  { %p635_p7 = pnand %p633_p6, %p630_p5 }
 0x2e1   :  { %638 = shalt.err (!%p635_p7)
}
 0x2e2   :  { %470 = dma.vmem_to_hbm [thread:$0]  %s468_s9, 128, %s811_s7, [#allocation3]  }
 0x2e3   :  { %639 = dma.done.wait [#allocation3], 128  }
 0x2e4   :  { %640 = vsyncadd [#allocation3], 4294967168 }
 0x2e5   :  { %474 = vsyncpa [#allocation3], 1 }

</bundles_post_ra>
